<compile_context>
chip_gen: v7x
topology: tpu7x:2x2x1
jax: 0.10.0
libtpu: 0.0.40
codegen_flags: <defaults>
</compile_context>

<pallas_src>
import functools

import jax
import jax.numpy as jnp
from jax.experimental import pallas as pl
from jax.experimental.pallas import tpu as pltpu


def _affine_relu_kernel(x_ref, o_ref, *, scale, shift):
    # Elementwise: relu(scale * x + shift). scale/shift are Python constants
    # baked in at trace time (weak-typed, so bf16 inputs stay bf16).
    o_ref[...] = jnp.maximum(x_ref[...] * scale + shift, 0.0)


# Below this total size, use one full-extent block (no grid): launch overhead
# dominates anyway and a full-extent block handles any shape / raggedness.
_SMALL_BYTES = 2 << 20

# Per-buffer block target for the tiled path: ~4 MiB/buffer -> ~16 MiB of
# pipelined VMEM (in + out, double-buffered).
_TARGET_BLOCK_BYTES = 4 << 20

# Scoped VMEM budget: above the 16/32 MiB default limits (v5e/v6e) so the big
# blocks are accepted; below v7x's 64 MiB physical per-TC VMEM with headroom.
_VMEM_LIMIT_BYTES = 48 << 20


@functools.partial(jax.jit, static_argnames=("scale", "shift"))
def lambda_forward(x, scale, shift):
    """Pallas implementation of Lambda(func=relu(scale*x+shift))(x).

    x: float tensor of any shape (e.g. NCHW).
    scale, shift: compile-time Python scalars (the `extra_args` of Lambda).
    Returns a tensor with the same shape/dtype as x.
    """
    orig_shape = x.shape
    n = x.size
    dtype = x.dtype
    itemsize = dtype.itemsize
    total_bytes = n * itemsize

    kernel = functools.partial(
        _affine_relu_kernel, scale=float(scale), shift=float(shift))

    # ---- Small path: single full-extent block, any shape, no pad/slice. ----
    if total_bytes <= _SMALL_BYTES:
        x2d = jnp.reshape(x, (1, n))
        out2d = pl.pallas_call(
            kernel,
            out_shape=jax.ShapeDtypeStruct((1, n), dtype),
        )(x2d)
        return jnp.reshape(out2d, orig_shape)

    # ---- Large path: lane-dense tiled slab, pipelined over rows. ----
    # Widest lane-dense last dim (multiple of 128) dividing n => pure-view reshape.
    width = None
    for w in (2048, 1024, 512, 256, 128):
        if n % w == 0:
            width = w
            break

    if width is None:
        # Ragged fallback: pad once to a tileable size.
        # TODO(synk): handle the ragged lane tail in-kernel with a masked
        # store on the last block instead of pad + tail-slice HBM passes.
        width = 128
        padded = pl.cdiv(n, width) * width
        x_flat = jnp.pad(jnp.reshape(x, (-1,)), (0, padded - n))
    else:
        padded = n
        x_flat = jnp.reshape(x, (-1,))

    rows = padded // width
    x2d = jnp.reshape(x_flat, (rows, width))

    # dtype-aware sublane packing: 8 rows for f32, 16 for bf16, 32 for int8/fp8.
    sub = max(8, 32 // itemsize)

    # Row-block targeting ~_TARGET_BLOCK_BYTES per buffer, sublane-aligned.
    tr = _TARGET_BLOCK_BYTES // (width * itemsize)
    tr = max(sub, (tr // sub) * sub)

    # Keep at least 2 grid steps so both v7x TensorCores get work
    # (dimension_semantics=("parallel",) shards the grid across them).
    if tr >= rows:
        half = pl.cdiv(rows, 2)
        tr = ((half + sub - 1) // sub) * sub
    tr = min(tr, rows)

    grid = (pl.cdiv(rows, tr),)  # partial last block handled by Pallas

    out2d = pl.pallas_call(
        kernel,
        out_shape=jax.ShapeDtypeStruct((rows, width), dtype),
        grid_spec=pltpu.PrefetchScalarGridSpec(
            num_scalar_prefetch=0,
            grid=grid,
            in_specs=[pl.BlockSpec((tr, width), lambda i: (i, 0))],
            out_specs=pl.BlockSpec((tr, width), lambda i: (i, 0)),
        ),
        compiler_params=pltpu.CompilerParams(
            dimension_semantics=("parallel",),
            vmem_limit_bytes=_VMEM_LIMIT_BYTES,
        ),
    )(x2d)

    out_flat = jnp.reshape(out2d, (-1,))
    if padded != n:
        out_flat = out_flat[:n]
    return jnp.reshape(out_flat, orig_shape)


class LambdaPallas:
    """Mirror of pri/utils.py::Lambda; `func` is realized as a Pallas kernel."""

    def __init__(self, func, extra_args=(), extra_kwargs={}):
        self.func = func
        self.extra_args = extra_args
        self.extra_kwargs = extra_kwargs

    def __call__(self, x):
        return self.func(x, *self.extra_args, **self.extra_kwargs)


if __name__ == "__main__":
    key = jax.random.PRNGKey(0)
    # NCHW input, small shapes: batch=2, channels=4, spatial=16x16.
    x = jax.random.normal(key, (2, 4, 16, 16), dtype=jnp.float32)

    scale = 2.0
    shift = 0.5
    module = LambdaPallas(lambda_forward, extra_args=(scale, shift))

    out = module(x)
    out = jax.block_until_ready(out)

    # Pure-JAX reference for the same concrete func.
    ref = jnp.maximum(scale * x + shift, 0.0)
    assert out.shape == x.shape and out.dtype == x.dtype
    assert jnp.allclose(out, ref, atol=1e-6, rtol=1e-6)

    # Exercise the tiled (large, lane-aligned) path as well.
    x_big = jax.random.normal(key, (8, 64, 64, 64), dtype=jnp.float32)  # 8 MiB
    out_big = jax.block_until_ready(module(x_big))
    ref_big = jnp.maximum(scale * x_big + shift, 0.0)
    assert jnp.allclose(out_big, ref_big, atol=1e-6, rtol=1e-6)

    print("KERNEL_OK")
</pallas_src>

<mosaic_0001>
module attributes {stable_mosaic.version = 11 : i64} {
  func.func @_affine_relu_kernel(%arg0: memref<1x2048xf32, #tpu.memory_space<vmem>>, %arg1: memref<1x2048xf32, #tpu.memory_space<vmem>>) attributes {dimension_semantics = [], scalar_prefetch = 0 : i64, scratch_operands = 0 : i64, tpu.core_type = #tpu.core_type<tc>} {
    %c0 = arith.constant 0 : index
    %c0_0 = arith.constant 0 : index
    %0 = vector.load %arg0[%c0, %c0_0] : memref<1x2048xf32, #tpu.memory_space<vmem>>, vector<1x2048xf32>
    %cst = arith.constant 2.000000e+00 : f32
    %1 = vector.broadcast %cst : f32 to vector<1x2048xf32>
    %2 = arith.mulf %0, %1 : vector<1x2048xf32>
    %cst_1 = arith.constant 5.000000e-01 : f32
    %3 = vector.broadcast %cst_1 : f32 to vector<1x2048xf32>
    %4 = arith.addf %2, %3 : vector<1x2048xf32>
    %cst_2 = arith.constant 0.000000e+00 : f32
    %5 = vector.broadcast %cst_2 : f32 to vector<1x2048xf32>
    %6 = arith.maximumf %4, %5 : vector<1x2048xf32>
    %c0_3 = arith.constant 0 : index
    %c0_4 = arith.constant 0 : index
    %7 = vector.load %arg1[%c0_3, %c0_4] : memref<1x2048xf32, #tpu.memory_space<vmem>>, vector<1x2048xf32>
    tpu.vector_store %arg1[%c0_3, %c0_4], %6 {strides = array<i32>} : memref<1x2048xf32, #tpu.memory_space<vmem>>, vector<1x2048xf32>,
    return
  }
}

</mosaic_0001>

<bundles_post_ra>
// kernel: lambda_forward.1
= control target key start
LH: loop header
LB: loop body
LE: loop exit
PB: predicated region body
PF: predicated region fallthrough
CT: control target
= control target key end

     0   :  { %s44_s0 = inlined_call_operand.vmem [shape: f32[1,2048], index: 0, kind: input, shape index: {}]   ;;  %s45_s1 = inlined_call_operand.vmem [shape: f32[1,2048], index: 1, kind: output, shape index: {}]  }
   0x1   :  { %v8_v0 = vld [vmem:[%s44_s0] sm:$0xff]  ;;  %v9_v1 = vld [vmem:[%s44_s0 + $0x8] sm:$0xff] }
   0x2   :  { %v10_v2 = vmul.f32 2.0, %v8_v0  ;;  %v11_v3 = vmul.f32 2.0, %v9_v1 }
   0x4   :  { %v12_v4 = vadd.f32 0.5, %v10_v2  ;;  %v13_v5 = vadd.f32 0.5, %v11_v3 }
   0x6   :  { %v14_v6 = vmax.f32 %v12_v4, 0.0  ;;  %v15_v7 = vmax.f32 %v13_v5, 0.0 }
   0x8   :  { %16 = vst [vmem:[%s45_s1] sm:$0xff] %v14_v6  ;;  %17 = vst [vmem:[%s45_s1 + $0x8] sm:$0xff] %v15_v7 }

</bundles_post_ra>
